<compile_context>
chip_gen: v5e
topology: v5e:2x2
jax: 0.10.0
libtpu: 0.0.40
codegen_flags: <defaults>
</compile_context>

<pallas_src>
import functools

import jax
import jax.numpy as jnp
from jax.experimental import pallas as pl
from jax.experimental.pallas import tpu as pltpu


_LANE = 128
_MAX_ROW_TILE = 128                  # row tile when batch is large
_MAX_COL_TILE = 4096                 # cap on w2 column tile
_VMEM_TILE_BUDGET = 40 * 2 ** 20     # v7x-safe (64 MiB physical per TC)
_VMEM_LIMIT_BYTES = 48 * 2 ** 20     # explicit scoped-VMEM limit for both calls


def _round_up(x, m):
    return ((x + m - 1) // m) * m


def _cdiv(a, b):
    return (a + b - 1) // b


# ----------------------------------------------------------------------------
# Kernels
# ----------------------------------------------------------------------------
def _mish(z):
    """Mish(z) = z * tanh(softplus(z)) via a single exp + approx reciprocal.

    tanh(log(1+t)) = t(t+2) / (t(t+2)+2)  with t = exp(z).  z is clamped before
    exp so no inf intermediates appear; for clamped z the ratio is 1 to f32
    precision, matching mish(z) ~= z.
    """
    t = jnp.exp(jnp.minimum(z, 20.0))
    n = t * (t + 2.0)
    return z * n * pl.reciprocal(n + 2.0, approx=True)


def _hidden_kernel(x_ref, w1_ref, b1_ref, h_ref):
    """h = Mish(x @ W1 + b1), one MXU pass for both dueling-branch first layers.

    x_ref : [tm, H]   bf16
    w1_ref: [H, 2H]   bf16  concat(adv_l1, val_l1)
    b1_ref: [1, 2H]   f32
    h_ref : [tm, 2H]  bf16
    """
    z = jnp.dot(x_ref[...], w1_ref[...],
                preferred_element_type=jnp.float32) + b1_ref[...]
    h_ref[...] = _mish(z).astype(h_ref.dtype)


def _combine_kernel(h_ref, w2_ref, b2_ref, out_ref):
    """out = h @ W2 + b2, the folded dueling/distributional combine.

    h_ref  : [tm, 2H]  bf16
    w2_ref : [2H, tn]  bf16  column tile of folded combine weights
    b2_ref : [1, tn]   f32
    out_ref: [tm, tn]  bf16  column tile of flat (padded) V*Q output
    """
    acc = jnp.dot(h_ref[...], w2_ref[...], preferred_element_type=jnp.float32)
    out_ref[...] = (acc + b2_ref[...]).astype(out_ref.dtype)


# ----------------------------------------------------------------------------
# One-time parameter fusion (host/XLA side, outside the per-call path)
# ----------------------------------------------------------------------------
def fuse_generator_params(params, *, tgt_vocab_size, quantiles,
                          vmem_budget=_VMEM_TILE_BUDGET):
    """Fold dueling combine + branch concat into two affine layers and pick a
    VMEM-budgeted column tile; pad the output columns to a multiple of that
    tile (and to >= 2 tiles) so stores are lane-dense and the column grid has
    at least two independent steps."""
    V, Q = tgt_vocab_size, quantiles
    VQ = V * Q
    H = params["aw1"].shape[0]
    H2 = 2 * H

    # --- fused first layer: [H, 2H] ------------------------------------------
    w1 = jnp.concatenate([params["aw1"], params["vw1"]], axis=1)
    b1 = jnp.concatenate([params["ab1"], params["vb1"]], axis=1)

    # --- fold mean-over-vocab subtraction into the advantage weights ---------
    # mmat[v*Q+q, q] = 1/V  =>  (aw2 @ mmat)[:, q] = mean_v aw2[:, v*Q+q]
    row = jnp.arange(VQ) % Q
    col = jnp.arange(Q)
    mmat = (row[:, None] == col[None, :]).astype(jnp.float32) / V      # [VQ, Q]
    aw2_c = params["aw2"] - jnp.tile(params["aw2"] @ mmat, (1, V))     # [H, VQ]
    ab2_c = params["ab2"] - jnp.tile(params["ab2"] @ mmat, (1, V))     # [1, VQ]

    # --- replicate value head across the vocab axis --------------------------
    vw2_rep = jnp.tile(params["vw2"], (1, V))                          # [H, VQ]
    vb2_rep = jnp.tile(params["vb2"], (1, V))                          # [1, VQ]

    w2 = jnp.concatenate([aw2_c, vw2_rep], axis=0)                     # [2H, VQ]
    b2 = ab2_c + vb2_rep                                               # [1, VQ]

    # --- column tile from a VMEM budget (v7x-safe) ----------------------------
    # stage-2 residents: w2 tile (2 bufs, bf16), b2 tile (2 bufs, f32),
    # out tile (2 bufs, bf16), h (single buffer, bf16, worst-case row tile).
    per_col = 2 * (H2 * 2) + 2 * 4 + 2 * (_MAX_ROW_TILE * 2)
    fixed = _MAX_ROW_TILE * H2 * 2
    tn_cap = max(_LANE, ((vmem_budget - fixed) // per_col) // _LANE * _LANE)
    tn_cap = min(tn_cap, _MAX_COL_TILE)
    # don't make the tile wider than ~half the output: keep >= 2 column steps
    tn_need = max(_LANE, _round_up(_cdiv(VQ, 2), _LANE))
    tn = min(tn_cap, tn_need)

    n_col = max(2, _cdiv(VQ, tn))
    vq_pad = n_col * tn
    pad = vq_pad - VQ
    if pad:
        w2 = jnp.pad(w2, ((0, 0), (0, pad)))
        b2 = jnp.pad(b2, ((0, 0), (0, pad)))

    return dict(
        w1=w1.astype(jnp.bfloat16), b1=b1.astype(jnp.float32),
        w2=w2.astype(jnp.bfloat16), b2=b2.astype(jnp.float32),
        vq=VQ, vq_pad=vq_pad, tn=tn,
    )


# ----------------------------------------------------------------------------
# Wrapper
# ----------------------------------------------------------------------------
def generator_forward(x, fused, *, tgt_vocab_size, quantiles):
    """Runs the two fused Pallas kernels; returns [1, B, V, Q] (torch's
    adv.view(-1, batch, V, Q) semantics) in f32."""
    B, H = x.shape
    V, Q = tgt_vocab_size, quantiles
    VQ, VQp, tn = fused["vq"], fused["vq_pad"], fused["tn"]
    H2 = fused["w1"].shape[1]

    # Row padding / tile: multiple of 16 (bf16 sublane packing); row grid axis
    # for large batches (raises arithmetic intensity on the streamed w2).
    B_pad = max(16, _round_up(B, 16))
    if B_pad > _MAX_ROW_TILE:
        B_pad = _round_up(B_pad, _MAX_ROW_TILE)
        tm = _MAX_ROW_TILE
    else:
        tm = B_pad
    n_row = B_pad // tm
    n_col = VQp // tn

    xb = jnp.pad(x.astype(jnp.bfloat16), ((0, B_pad - B), (0, 0)))

    def _run(use_buffered):
        def spec(shape, index_map, single_buffer=False):
            if use_buffered and single_buffer:
                return pl.BlockSpec(shape, index_map,
                                    pipeline_mode=pl.Buffered(1))
            return pl.BlockSpec(shape, index_map)

        # ---- stage 1: h = Mish(x @ W1 + b1), computed ONCE (hoisted out of
        #      the column-tile grid per perf review) --------------------------
        h = pl.pallas_call(
            _hidden_kernel,
            out_shape=jax.ShapeDtypeStruct((B_pad, H2), jnp.bfloat16),
            grid_spec=pltpu.PrefetchScalarGridSpec(
                num_scalar_prefetch=0,
                grid=(n_row,),
                in_specs=[
                    spec((tm, H), lambda i: (i, 0)),
                    spec((H, H2), lambda i: (0, 0), single_buffer=True),
                    spec((1, H2), lambda i: (0, 0), single_buffer=True),
                ],
                out_specs=pl.BlockSpec((tm, H2), lambda i: (i, 0)),
            ),
            compiler_params=pltpu.CompilerParams(
                dimension_semantics=("parallel",),
                vmem_limit_bytes=_VMEM_LIMIT_BYTES),
            cost_estimate=pl.CostEstimate(
                flops=2 * B_pad * H * H2,
                transcendentals=B_pad * H2,
                bytes_accessed=(B_pad * H + H * H2 + B_pad * H2) * 2 + H2 * 4),
        )(xb, fused["w1"], fused["b1"])

        # ---- stage 2: out = h @ W2 + b2 (dueling combine folded into W2/b2),
        #      lane-dense column tiles, >= 2 parallel grid steps --------------
        out = pl.pallas_call(
            _combine_kernel,
            out_shape=jax.ShapeDtypeStruct((B_pad, VQp), jnp.bfloat16),
            grid_spec=pltpu.PrefetchScalarGridSpec(
                num_scalar_prefetch=0,
                grid=(n_row, n_col),
                in_specs=[
                    spec((tm, H2), lambda i, j: (i, 0),
                         single_buffer=(n_row == 1)),
                    spec((H2, tn), lambda i, j: (0, j)),   # streaming: 2 bufs
                    spec((1, tn), lambda i, j: (0, j)),    # streaming: 2 bufs
                ],
                out_specs=pl.BlockSpec((tm, tn), lambda i, j: (i, j)),
            ),
            compiler_params=pltpu.CompilerParams(
                dimension_semantics=("parallel", "parallel"),
                vmem_limit_bytes=_VMEM_LIMIT_BYTES),
            cost_estimate=pl.CostEstimate(
                flops=2 * B_pad * H2 * VQp,
                transcendentals=0,
                bytes_accessed=(B_pad * H2 + H2 * VQp + B_pad * VQp) * 2
                               + VQp * 4),
        )(h, fused["w2"], fused["b2"])
        return out

    try:
        out_flat = _run(use_buffered=True)
    except Exception:
        # pipeline_mode=pl.Buffered(1) is only a hint: fall back to default
        # double buffering if this jax/Mosaic build rejects it.
        out_flat = _run(use_buffered=False)

    return out_flat[:B, :VQ].astype(jnp.float32).reshape(1, B, V, Q)


# ----------------------------------------------------------------------------
# Parameter construction (deterministic "sampled" NoisyLinear effective weights)
# ----------------------------------------------------------------------------
def make_params(key, rnn_size, tgt_vocab_size, quantiles):
    H, VQ, Q = rnn_size, tgt_vocab_size * quantiles, quantiles

    def noisy_linear(key, fan_in, fan_out):
        k_mu_w, k_mu_b, k_eps_w, k_eps_b = jax.random.split(key, 4)
        bound = 1.0 / jnp.sqrt(fan_in)
        sigma0 = 0.5 / jnp.sqrt(fan_in)
        w_mu = jax.random.uniform(k_mu_w, (fan_in, fan_out), jnp.float32,
                                  -bound, bound)
        b_mu = jax.random.uniform(k_mu_b, (1, fan_out), jnp.float32,
                                  -bound, bound)
        eps_w = jax.random.normal(k_eps_w, (fan_in, fan_out), jnp.float32)
        eps_b = jax.random.normal(k_eps_b, (1, fan_out), jnp.float32)
        return w_mu + sigma0 * eps_w, b_mu + sigma0 * eps_b

    k1, k2, k3, k4 = jax.random.split(key, 4)
    aw1, ab1 = noisy_linear(k1, H, H)
    aw2, ab2 = noisy_linear(k2, H, VQ)
    vw1, vb1 = noisy_linear(k3, H, H)
    vw2, vb2 = noisy_linear(k4, H, Q)
    return dict(aw1=aw1, ab1=ab1, aw2=aw2, ab2=ab2,
                vw1=vw1, vb1=vb1, vw2=vw2, vb2=vb2)


# ----------------------------------------------------------------------------
# References
# ----------------------------------------------------------------------------
def reference_forward(x, params, *, tgt_vocab_size, quantiles):
    """Pure-JAX f32 reference matching the torch Generator (dueling+distrib)."""
    B = x.shape[0]

    def mish(z):
        return z * jnp.tanh(jax.nn.softplus(z))

    h_a = mish(x @ params["aw1"] + params["ab1"])
    adv = (h_a @ params["aw2"] + params["ab2"]).reshape(
        -1, B, tgt_vocab_size, quantiles)
    h_v = mish(x @ params["vw1"] + params["vb1"])
    val = (h_v @ params["vw2"] + params["vb2"]).reshape(-1, B, 1, quantiles)
    adv_mean = adv.mean(axis=2, keepdims=True)
    return val + (adv - adv_mean)


def reference_fused(x, fused, *, tgt_vocab_size, quantiles):
    """Pure-JAX reference of the *fused* (bf16-weight, bf16-output) compute:
    validates the kernels tightly (same rounded weights, exact mish)."""
    B = x.shape[0]
    V, Q, VQ = tgt_vocab_size, quantiles, fused["vq"]

    def mish(z):
        return z * jnp.tanh(jax.nn.softplus(z))

    xb = x.astype(jnp.bfloat16).astype(jnp.float32)
    w1 = fused["w1"].astype(jnp.float32)
    w2 = fused["w2"].astype(jnp.float32)
    h = mish(xb @ w1 + fused["b1"])
    hb = h.astype(jnp.bfloat16).astype(jnp.float32)
    out = hb @ w2 + fused["b2"]
    out = out.astype(jnp.bfloat16).astype(jnp.float32)   # kernel stores bf16
    return out[:, :VQ].reshape(1, B, V, Q)


# ----------------------------------------------------------------------------
if __name__ == "__main__":
    # small config: rnn_size=32, tgt_vocab_size=16, quantiles=4, batch=8
    RNN_SIZE, VOCAB, QUANT, BATCH = 32, 16, 4, 8

    key = jax.random.PRNGKey(0)
    k_params, k_x = jax.random.split(key)
    params = make_params(k_params, RNN_SIZE, VOCAB, QUANT)
    x = jax.random.normal(k_x, (BATCH, RNN_SIZE), jnp.float32)

    fused = fuse_generator_params(params, tgt_vocab_size=VOCAB,
                                  quantiles=QUANT)

    fwd = functools.partial(generator_forward,
                            tgt_vocab_size=VOCAB, quantiles=QUANT)
    out = jax.block_until_ready(fwd(x, fused))
    assert out.shape == (1, BATCH, VOCAB, QUANT), out.shape

    # Tight check: kernel vs. identical fused bf16 math (validates kernel
    # numerics: MXU f32 accumulation, approx-reciprocal Mish, bf16 output;
    # tolerance covers ~1 bf16 ulp of output rounding divergence).
    ref_tight = reference_fused(x, fused, tgt_vocab_size=VOCAB,
                                quantiles=QUANT)
    assert jnp.allclose(out, ref_tight, atol=1.5e-2, rtol=1.5e-2), \
        "mismatch vs fused bf16 reference"

    # Loose check: kernel vs. original f32 torch-formula reference (validates
    # that the algebraic folding preserves the module semantics; tolerance
    # loosened for the bf16 weight/activation/output casts).
    ref_f32 = reference_forward(x, params, tgt_vocab_size=VOCAB,
                                quantiles=QUANT)
    assert jnp.allclose(out, ref_f32, atol=6e-2, rtol=6e-2), \
        "mismatch vs f32 torch reference"

    print("KERNEL_OK")
</pallas_src>

<mosaic_0001>
module attributes {stable_mosaic.version = 11 : i64} {
  func.func @_hidden_kernel(%arg0: i32, %arg1: memref<16x32xbf16, #tpu.memory_space<vmem>>, %arg2: memref<32x64xbf16, #tpu.memory_space<vmem>>, %arg3: memref<1x64xf32, #tpu.memory_space<vmem>>, %arg4: memref<16x64xbf16, #tpu.memory_space<vmem>>) attributes {dimension_semantics = [#tpu.dimension_semantics<parallel>], iteration_bounds = array<i64: 1>, scalar_prefetch = 0 : i64, scratch_operands = 0 : i64, tpu.core_type = #tpu.core_type<tc>, window_params = [{transform_indices = @transform_0, window_bounds = array<i64: 16, 32>}, {pipeline_mode = #tpu.pipeline_mode<synchronous>, transform_indices = @transform_1, window_bounds = array<i64: 32, 64>}, {pipeline_mode = #tpu.pipeline_mode<synchronous>, transform_indices = @transform_2, window_bounds = array<i64: 1, 64>}, {transform_indices = @transform_3, window_bounds = array<i64: 16, 64>}]} {
    %c0 = arith.constant 0 : index
    %c0_0 = arith.constant 0 : index
    %0 = vector.load %arg1[%c0, %c0_0] : memref<16x32xbf16, #tpu.memory_space<vmem>>, vector<16x32xbf16>
    %c0_1 = arith.constant 0 : index
    %c0_2 = arith.constant 0 : index
    %1 = vector.load %arg2[%c0_1, %c0_2] : memref<32x64xbf16, #tpu.memory_space<vmem>>, vector<32x64xbf16>
    %cst = arith.constant dense<0.000000e+00> : vector<16x64xf32>
    %2 = tpu.matmul %0, %1, %cst {dimension_numbers = #tpu.dot_dimension_numbers<[1], [0], [0], [1], [0, 0, 1, 1], [], []>} : vector<16x32xbf16>, vector<32x64xbf16>, vector<16x64xf32> -> vector<16x64xf32>
    %c0_3 = arith.constant 0 : index
    %c0_4 = arith.constant 0 : index
    %3 = vector.load %arg3[%c0_3, %c0_4] : memref<1x64xf32, #tpu.memory_space<vmem>>, vector<1x64xf32>
    %4 = vector.broadcast %3 : vector<1x64xf32> to vector<16x64xf32>
    %5 = arith.addf %2, %4 : vector<16x64xf32>
    %cst_5 = arith.constant 2.000000e+01 : f32
    %6 = vector.broadcast %cst_5 : f32 to vector<16x64xf32>
    %7 = arith.minimumf %5, %6 : vector<16x64xf32>
    %8 = math.exp %7 : vector<16x64xf32>
    %cst_6 = arith.constant 2.000000e+00 : f32
    %9 = vector.broadcast %cst_6 : f32 to vector<16x64xf32>
    %10 = arith.addf %8, %9 : vector<16x64xf32>
    %11 = arith.mulf %8, %10 : vector<16x64xf32>
    %12 = arith.mulf %5, %11 : vector<16x64xf32>
    %cst_7 = arith.constant 2.000000e+00 : f32
    %13 = vector.broadcast %cst_7 : f32 to vector<16x64xf32>
    %14 = arith.addf %11, %13 : vector<16x64xf32>
    %15 = tpu.reciprocal %14 {approx = true} : vector<16x64xf32> -> vector<16x64xf32>
    %16 = arith.mulf %12, %15 : vector<16x64xf32>
    %17 = arith.truncf %16 : vector<16x64xf32> to vector<16x64xbf16>
    %c0_8 = arith.constant 0 : index
    %c0_9 = arith.constant 0 : index
    %18 = vector.load %arg4[%c0_8, %c0_9] : memref<16x64xbf16, #tpu.memory_space<vmem>>, vector<16x64xbf16>
    tpu.vector_store %arg4[%c0_8, %c0_9], %17 {strides = array<i32>} : memref<16x64xbf16, #tpu.memory_space<vmem>>, vector<16x64xbf16>,
    return
  }
  func.func @transform_0(%arg0: i32) -> (i32, i32) {
    %c0_i32 = arith.constant 0 : i32
    %c0_i32_0 = arith.constant 0 : i32
    return %arg0, %c0_i32 : i32, i32
  }
  func.func @transform_1(%arg0: i32) -> (i32, i32) {
    %c0_i32 = arith.constant 0 : i32
    %c0_i32_0 = arith.constant 0 : i32
    %c0_i32_1 = arith.constant 0 : i32
    return %c0_i32, %c0_i32_0 : i32, i32
  }
  func.func @transform_2(%arg0: i32) -> (i32, i32) {
    %c0_i32 = arith.constant 0 : i32
    %c0_i32_0 = arith.constant 0 : i32
    %c0_i32_1 = arith.constant 0 : i32
    return %c0_i32, %c0_i32_0 : i32, i32
  }
  func.func @transform_3(%arg0: i32) -> (i32, i32) {
    %c0_i32 = arith.constant 0 : i32
    %c0_i32_0 = arith.constant 0 : i32
    return %arg0, %c0_i32 : i32, i32
  }
}

module attributes {stable_mosaic.version = 11 : i64} {
  func.func @_hidden_kernel(%arg0: i32, %arg1: memref<16x32xbf16, #tpu.memory_space<vmem>>, %arg2: memref<32x64xbf16, #tpu.memory_space<vmem>>, %arg3: memref<1x64xf32, #tpu.memory_space<vmem>>, %arg4: memref<16x64xbf16, #tpu.memory_space<vmem>>) attributes {dimension_semantics = [#tpu.dimension_semantics<parallel>], iteration_bounds = array<i64: 1>, scalar_prefetch = 0 : i64, scratch_operands = 0 : i64, tpu.core_type = #tpu.core_type<tc>, window_params = [{transform_indices = @transform_0, window_bounds = array<i64: 16, 32>}, {pipeline_mode = #tpu.pipeline_mode<synchronous>, transform_indices = @transform_1, window_bounds = array<i64: 32, 64>}, {pipeline_mode = #tpu.pipeline_mode<synchronous>, transform_indices = @transform_2, window_bounds = array<i64: 1, 64>}, {transform_indices = @transform_3, window_bounds = array<i64: 16, 64>}]} {
    %c0 = arith.constant 0 : index
    %c0_0 = arith.constant 0 : index
    %0 = vector.load %arg1[%c0, %c0_0] : memref<16x32xbf16, #tpu.memory_space<vmem>>, vector<16x32xbf16>
    %c0_1 = arith.constant 0 : index
    %c0_2 = arith.constant 0 : index
    %1 = vector.load %arg2[%c0_1, %c0_2] : memref<32x64xbf16, #tpu.memory_space<vmem>>, vector<32x64xbf16>
    %cst = arith.constant dense<0.000000e+00> : vector<16x64xf32>
    %2 = tpu.matmul %0, %1, %cst {dimension_numbers = #tpu.dot_dimension_numbers<[1], [0], [0], [1], [0, 0, 1, 1], [], []>} : vector<16x32xbf16>, vector<32x64xbf16>, vector<16x64xf32> -> vector<16x64xf32>
    %c0_3 = arith.constant 0 : index
    %c0_4 = arith.constant 0 : index
    %3 = vector.load %arg3[%c0_3, %c0_4] : memref<1x64xf32, #tpu.memory_space<vmem>>, vector<1x64xf32>
    %4 = vector.broadcast %3 : vector<1x64xf32> to vector<16x64xf32>
    %5 = arith.addf %2, %4 : vector<16x64xf32>
    %cst_5 = arith.constant 2.000000e+01 : f32
    %6 = vector.broadcast %cst_5 : f32 to vector<16x64xf32>
    %7 = arith.minimumf %5, %6 : vector<16x64xf32>
    %8 = math.exp %7 : vector<16x64xf32>
    %cst_6 = arith.constant 2.000000e+00 : f32
    %9 = vector.broadcast %cst_6 : f32 to vector<16x64xf32>
    %10 = arith.addf %8, %9 : vector<16x64xf32>
    %11 = arith.mulf %8, %10 : vector<16x64xf32>
    %12 = arith.mulf %5, %11 : vector<16x64xf32>
    %cst_7 = arith.constant 2.000000e+00 : f32
    %13 = vector.broadcast %cst_7 : f32 to vector<16x64xf32>
    %14 = arith.addf %11, %13 : vector<16x64xf32>
    %15 = tpu.reciprocal %14 {approx = true} : vector<16x64xf32> -> vector<16x64xf32>
    %16 = arith.mulf %12, %15 : vector<16x64xf32>
    %17 = arith.truncf %16 : vector<16x64xf32> to vector<16x64xbf16>
    %c0_8 = arith.constant 0 : index
    %c0_9 = arith.constant 0 : index
    %18 = vector.load %arg4[%c0_8, %c0_9] : memref<16x64xbf16, #tpu.memory_space<vmem>>, vector<16x64xbf16>
    tpu.vector_store %arg4[%c0_8, %c0_9], %17 {strides = array<i32>} : memref<16x64xbf16, #tpu.memory_space<vmem>>, vector<16x64xbf16>,
    return
  }
  func.func @transform_0(%arg0: i32) -> (i32, i32) {
    %c0_i32 = arith.constant 0 : i32
    %c0_i32_0 = arith.constant 0 : i32
    return %arg0, %c0_i32 : i32, i32
  }
  func.func @transform_1(%arg0: i32) -> (i32, i32) {
    %c0_i32 = arith.constant 0 : i32
    %c0_i32_0 = arith.constant 0 : i32
    %c0_i32_1 = arith.constant 0 : i32
    return %c0_i32, %c0_i32_0 : i32, i32
  }
  func.func @transform_2(%arg0: i32) -> (i32, i32) {
    %c0_i32 = arith.constant 0 : i32
    %c0_i32_0 = arith.constant 0 : i32
    %c0_i32_1 = arith.constant 0 : i32
    return %c0_i32, %c0_i32_0 : i32, i32
  }
  func.func @transform_3(%arg0: i32) -> (i32, i32) {
    %c0_i32 = arith.constant 0 : i32
    %c0_i32_0 = arith.constant 0 : i32
    return %arg0, %c0_i32 : i32, i32
  }
}

</mosaic_0001>

<bundles_post_ra>
// kernel: tpu_custom_call.1
= control target key start
LH: loop header
LB: loop body
LE: loop exit
PB: predicated region body
PF: predicated region fallthrough
CT: control target
= control target key end

     0   :  { %8 = vsyncpa [#allocation3], 0  ;;  %s290_s0 = inlined_call_operand.hbm [shape: bf16[16,32], index: 0, kind: input, shape index: {}]   ;;  %s291_s1 = inlined_call_operand.hbm [shape: bf16[32,64], index: 1, kind: input, shape index: {}]   ;;  %s292_s2 = inlined_call_operand.vmem [shape: f32[1,64], index: 2, kind: input, shape index: {}]   ;;  %s293_s3 = inlined_call_operand.hbm [shape: bf16[16,64], index: 3, kind: output, shape index: {}]  }
   0x1   :  { %9 = vsyncpa [#allocation6], 0 }
   0x2   :  { %10 = vsyncpa [#allocation4], 0  ;;  %s15_s14 = sshll.u32 %s290_s0, 4  ;;  %s244_s15 = smov [#allocation2]   ;;  %s16_s14 = int_to_ptr.hbm [resolvable:$true] %s15_s14 }
   0x3   :  { %s17_s16 = sshll.u32 %s244_s15, 4  ;;  %s28_s19 = sshll.u32 %s291_s1, 4  ;;  %s18_s16 = int_to_ptr.vmem [resolvable:$true] %s17_s16  ;;  %s29_s19 = int_to_ptr.hbm [resolvable:$true] %s28_s19 }
   0x4   :  { %s245_s20 = smov 64   ;;  %s246_s21 = smov 4  }
   0x5   :  { %23 = dma.hbm_to_vmem [thread:$0]  %s16_s14, 128, %s18_s16, [#allocation3], %s245_s20, %s245_s20, %s246_s21  }
   0x6   :  { %s247_s22 = smov [#allocation5]  }
   0x7   :  { %s30_s23 = sshll.u32 %s247_s22, 4  ;;  %s31_s23 = int_to_ptr.vmem [resolvable:$true] %s30_s23 }
   0x8   :  { %36 = dma.hbm_to_vmem [thread:$0]  %s29_s19, 256, %s31_s23, [#allocation6], %s245_s20, %s245_s20, %s246_s21  }
   0x9   :  { %238 = dma.done.wait [#allocation3], 128  }
   0xa   :  { %239 = vsyncadd [#allocation3], 4294967168 }
   0xb   :  { %240 = dma.done.wait [#allocation6], 256  }
   0xc   :  { %241 = vsyncadd [#allocation6], 4294967040  ;;  %v151_v0 = vld [vmem:[#allocation5 + $0x8] sm:$0xff]  ;;  %v150_v1 = vld [vmem:[#allocation5] sm:$0xff]  ;;  %vm75_vm0 = vcmask 261120   ;;  %vm113_vm1 = vcmask 519168  }
   0xd   :  { %85 = vmatpush.bf16.msra.mxu0 %v151_v0  ;;  %v149_v2 = vld [vmem:[#allocation2] sm:$0xff]  ;;  %s122_s27 = sshll.u32 %s293_s3, 4  ;;  %s123_s27 = int_to_ptr.hbm [resolvable:$true] %s122_s27 }
   0xe   :  { %v157_v3 = vld [vmem:[%s292_s2] ss:$0 sm:$0xff]  ;;  %s248_s2 = smov [#allocation7]  }
   0xf   :  { %s120_s24 = sshll.u32 %s248_s2, 4  ;;  %s121_s24 = int_to_ptr.vmem [resolvable:$true] %s120_s24 }
  0x11   :  { %86 = vmatpush.bf16.msra.mxu0 %v150_v1 }
  0x14   :  { %148 = vmatmul.msk.bf16.vlgmr.msra.gmra.mxu0 %vm75_vm0, %v149_v2 }
  0x91   :  { %v88_v4 = vpop.f32.mrf.mxu0 }
  0x92   :  { %v89_v5 = vadd.f32 %v157_v3, %v88_v4 }
  0x94   :  { %v93_v6 = vmin.f32 %v89_v5, 20.0 }
  0x96   :  { %v95_v7 = vmul.f32 1.442695, %v93_v6 }
  0x98   :  { %158 = vpow2.f32 %v95_v7 }
  0x99   :  { %v90_v8 = vpop.f32.mrf.mxu0 }
  0x9a   :  { %v91_v9 = vadd.f32 %v157_v3, %v90_v8 }
  0x9c   :  { %v94_v10 = vmin.f32 %v91_v9, 20.0 }
  0x9e   :  { %v159_v11 = vpop.eup %158  ;;  %v97_v12 = vmul.f32 1.442695, %v94_v10 }
  0x9f   :  { %v99_v13 = vadd.f32 2.0, %v159_v11 }
  0xa0   :  { %160 = vpow2.f32 %v97_v12 }
  0xa1   :  { %v101_v14 = vmul.f32 %v159_v11, %v99_v13 }
  0xa3   :  { %v105_v15 = vadd.f32 2.0, %v101_v14  ;;  %v103_v19 = vmul.f32 %v101_v14, %v89_v5 }
  0xa5   :  { %162 = vrcp.f32 %v105_v15 }
  0xa6   :  { %v161_v16 = vpop.eup %160 }
  0xa7   :  { %v100_v17 = vadd.f32 2.0, %v161_v16 }
  0xa9   :  { %v102_v18 = vmul.f32 %v161_v16, %v100_v17 }
  0xab   :  { %v163_v20 = vpop.eup %162  ;;  %v106_v21 = vadd.f32 2.0, %v102_v18  ;;  %v104_v24 = vmul.f32 %v102_v18, %v91_v9 }
  0xac   :  { %v109_v22 = vmul.f32 %v163_v20, %v103_v19 }
  0xad   :  { %164 = vrcp.f32 %v106_v21 }
  0xae   :  { %v111_v23 = vpack.c.bf16 %v109_v22, %v109_v22 }
  0xb0   :  { %114 = vst.msk [vmem:[#allocation7] sm:$0xf] %vm113_vm1, %v111_v23 }
  0xb3   :  { %v165_v25 = vpop.eup %164 }
  0xb4   :  { %v110_v26 = vmul.f32 %v165_v25, %v104_v24 }
  0xb6   :  { %v112_v27 = vpack.c.bf16 %v110_v26, %v110_v26 }
  0xb8   :  { %115 = vst.msk [vmem:[#allocation7 + $0x4] sm:$0xf] %vm113_vm1, %v112_v27 }
  0xb9   :  { %128 = dma.vmem_to_hbm [thread:$0]  %s121_s24, 128, %s123_s27, [#allocation4], %s245_s20, %s245_s20, %s246_s21  }
  0xba   :  { %242 = dma.done.wait [#allocation4], 128  }
  0xbb   :  { %243 = vsyncadd [#allocation4], 4294967168 }
  0xbc   :  { %133 = vsyncpa [#allocation3], 1 }
  0xbd   :  { %134 = vsyncpa [#allocation6], 1 }
  0xbe   :  { %135 = vsyncpa [#allocation4], 1 }

// kernel: tpu_custom_call.1
= control target key start
LH: loop header
LB: loop body
LE: loop exit
PB: predicated region body
PF: predicated region fallthrough
CT: control target
= control target key end

     0   :  { %8 = vsyncpa [#allocation3], 0  ;;  %s290_s0 = inlined_call_operand.hbm [shape: bf16[16,32], index: 0, kind: input, shape index: {}]   ;;  %s291_s1 = inlined_call_operand.hbm [shape: bf16[32,64], index: 1, kind: input, shape index: {}]   ;;  %s292_s2 = inlined_call_operand.vmem [shape: f32[1,64], index: 2, kind: input, shape index: {}]   ;;  %s293_s3 = inlined_call_operand.hbm [shape: bf16[16,64], index: 3, kind: output, shape index: {}]  }
   0x1   :  { %9 = vsyncpa [#allocation6], 0 }
   0x2   :  { %10 = vsyncpa [#allocation4], 0  ;;  %s15_s14 = sshll.u32 %s290_s0, 4  ;;  %s244_s15 = smov [#allocation2]   ;;  %s16_s14 = int_to_ptr.hbm [resolvable:$true] %s15_s14 }
   0x3   :  { %s17_s16 = sshll.u32 %s244_s15, 4  ;;  %s28_s19 = sshll.u32 %s291_s1, 4  ;;  %s18_s16 = int_to_ptr.vmem [resolvable:$true] %s17_s16  ;;  %s29_s19 = int_to_ptr.hbm [resolvable:$true] %s28_s19 }
   0x4   :  { %s245_s20 = smov 64   ;;  %s246_s21 = smov 4  }
   0x5   :  { %23 = dma.hbm_to_vmem [thread:$0]  %s16_s14, 128, %s18_s16, [#allocation3], %s245_s20, %s245_s20, %s246_s21  }
   0x6   :  { %s247_s22 = smov [#allocation5]  }
   0x7   :  { %s30_s23 = sshll.u32 %s247_s22, 4  ;;  %s31_s23 = int_to_ptr.vmem [resolvable:$true] %s30_s23 }
   0x8   :  { %36 = dma.hbm_to_vmem [thread:$0]  %s29_s19, 256, %s31_s23, [#allocation6], %s245_s20, %s245_s20, %s246_s21  }
   0x9   :  { %238 = dma.done.wait [#allocation3], 128  }
   0xa   :  { %239 = vsyncadd [#allocation3], 4294967168 }
   0xb   :  { %240 = dma.done.wait [#allocation6], 256  }
   0xc   :  { %241 = vsyncadd [#allocation6], 4294967040  ;;  %v151_v0 = vld [vmem:[#allocation5 + $0x8] sm:$0xff]  ;;  %v150_v1 = vld [vmem:[#allocation5] sm:$0xff]  ;;  %vm75_vm0 = vcmask 261120   ;;  %vm113_vm1 = vcmask 519168  }
   0xd   :  { %85 = vmatpush.bf16.msra.mxu0 %v151_v0  ;;  %v149_v2 = vld [vmem:[#allocation2] sm:$0xff]  ;;  %s122_s27 = sshll.u32 %s293_s3, 4  ;;  %s123_s27 = int_to_ptr.hbm [resolvable:$true] %s122_s27 }
   0xe   :  { %v157_v3 = vld [vmem:[%s292_s2] ss:$0 sm:$0xff]  ;;  %s248_s2 = smov [#allocation7]  }
   0xf   :  { %s120_s24 = sshll.u32 %s248_s2, 4  ;;  %s121_s24 = int_to_ptr.vmem [resolvable:$true] %s120_s24 }
  0x11   :  { %86 = vmatpush.bf16.msra.mxu0 %v150_v1 }
  0x14   :  { %148 = vmatmul.msk.bf16.vlgmr.msra.gmra.mxu0 %vm75_vm0, %v149_v2 }
  0x91   :  { %v88_v4 = vpop.f32.mrf.mxu0 }
  0x92   :  { %v89_v5 = vadd.f32 %v157_v3, %v88_v4 }
  0x94   :  { %v93_v6 = vmin.f32 %v89_v5, 20.0 }
  0x96   :  { %v95_v7 = vmul.f32 1.442695, %v93_v6 }
  0x98   :  { %158 = vpow2.f32 %v95_v7 }
  0x99   :  { %v90_v8 = vpop.f32.mrf.mxu0 }
  0x9a   :  { %v91_v9 = vadd.f32 %v157_v3, %v90_v8 }
  0x9c   :  { %v94_v10 = vmin.f32 %v91_v9, 20.0 }
  0x9e   :  { %v159_v11 = vpop.eup %158  ;;  %v97_v12 = vmul.f32 1.442695, %v94_v10 }
  0x9f   :  { %v99_v13 = vadd.f32 2.0, %v159_v11 }
  0xa0   :  { %160 = vpow2.f32 %v97_v12 }
  0xa1   :  { %v101_v14 = vmul.f32 %v159_v11, %v99_v13 }
  0xa3   :  { %v105_v15 = vadd.f32 2.0, %v101_v14  ;;  %v103_v19 = vmul.f32 %v101_v14, %v89_v5 }
  0xa5   :  { %162 = vrcp.f32 %v105_v15 }
  0xa6   :  { %v161_v16 = vpop.eup %160 }
  0xa7   :  { %v100_v17 = vadd.f32 2.0, %v161_v16 }
  0xa9   :  { %v102_v18 = vmul.f32 %v161_v16, %v100_v17 }
  0xab   :  { %v163_v20 = vpop.eup %162  ;;  %v106_v21 = vadd.f32 2.0, %v102_v18  ;;  %v104_v24 = vmul.f32 %v102_v18, %v91_v9 }
  0xac   :  { %v109_v22 = vmul.f32 %v163_v20, %v103_v19 }
  0xad   :  { %164 = vrcp.f32 %v106_v21 }
  0xae   :  { %v111_v23 = vpack.c.bf16 %v109_v22, %v109_v22 }
  0xb0   :  { %114 = vst.msk [vmem:[#allocation7] sm:$0xf] %vm113_vm1, %v111_v23 }
  0xb3   :  { %v165_v25 = vpop.eup %164 }
  0xb4   :  { %v110_v26 = vmul.f32 %v165_v25, %v104_v24 }
  0xb6   :  { %v112_v27 = vpack.c.bf16 %v110_v26, %v110_v26 }
  0xb8   :  { %115 = vst.msk [vmem:[#allocation7 + $0x4] sm:$0xf] %vm113_vm1, %v112_v27 }
  0xb9   :  { %128 = dma.vmem_to_hbm [thread:$0]  %s121_s24, 128, %s123_s27, [#allocation4], %s245_s20, %s245_s20, %s246_s21  }
  0xba   :  { %242 = dma.done.wait [#allocation4], 128  }
  0xbb   :  { %243 = vsyncadd [#allocation4], 4294967168 }
  0xbc   :  { %133 = vsyncpa [#allocation3], 1 }
  0xbd   :  { %134 = vsyncpa [#allocation6], 1 }
  0xbe   :  { %135 = vsyncpa [#allocation4], 1 }

</bundles_post_ra>
